<compile_context>
chip_gen: v7x
topology: tpu7x:2x2x1
jax: 0.10.0
libtpu: 0.0.40
codegen_flags: <defaults>
</compile_context>

<pallas_src>
import jax
import jax.numpy as jnp
from jax.experimental import pallas as pl
from jax.experimental.pallas import tpu as pltpu

_EPS = 1e-6  # matches LayerNormalization(eps=10**-6)


def _layer_norm_kernel(x_ref, w_ref, b_ref, o_ref):
    # x_ref: (ts, D)   w_ref/b_ref: (1, D)   o_ref: (ts, D)
    x = x_ref[...].astype(jnp.float32)
    d = x.shape[-1]
    mean = jnp.mean(x, axis=-1, keepdims=True)
    centered = x - mean
    # torch.std default is unbiased (divides by N-1).
    denom = max(d - 1, 1)
    var = jnp.sum(centered * centered, axis=-1, keepdims=True) / denom
    std = jnp.sqrt(var)
    # PyTorch module divides by (std + eps), not sqrt(var + eps).
    inv = 1.0 / (std + _EPS)
    w = w_ref[...].astype(jnp.float32)  # (1, D) broadcasts over (ts, D)
    b = b_ref[...].astype(jnp.float32)
    o_ref[...] = (w * (centered * inv) + b).astype(o_ref.dtype)


def _pick_row_tile(n_rows, d, dtype, target_bytes=4 * 1024 * 1024):
    """Row tile for the flattened (N, D) layout.

    Big enough (~4 MiB) to amortize the ~0.35us per-grid-step overhead and
    approach the HBM roofline; sublane rounding is dtype-aware (8 rows f32,
    16 bf16, 32 int8/fp8).  If everything would fit in one tile but the
    payload is non-trivial, split into ~2 tiles so v7x's two TensorCores
    both get work on the parallel axis.
    """
    itemsize = jnp.dtype(dtype).itemsize
    sub = {4: 8, 2: 16, 1: 32}.get(itemsize, 8)
    if n_rows <= sub:
        return n_rows
    rows = (target_bytes // max(d * itemsize, 1) // sub) * sub
    rows = max(sub, rows)
    if rows >= n_rows:
        if n_rows * d * itemsize >= (1 << 20):
            # Split into ~2 sublane-aligned tiles so the grid length is >= 2.
            rows = max(sub, pl.cdiv(n_rows, 2 * sub) * sub)
        else:
            rows = n_rows  # tiny problem: one full-extent block
    return min(rows, n_rows)


def layer_norm_pallas(x, weight, bias):
    """weight/bias: shape (D,). Returns LayerNormalization(x) with torch semantics.

    Works for any trailing dim D (full-D blocks satisfy the (8,128) rule by
    being equal to the full array extent), but D should be a multiple of 128
    for lane-dense stores; for very small D a plain XLA layer norm is as fast.
    """
    orig_shape = x.shape
    D = orig_shape[-1]
    N = 1
    for s in orig_shape[:-1]:
        N *= s
    x2 = x.reshape(N, D)

    itemsize = jnp.dtype(x.dtype).itemsize
    ts = _pick_row_tile(N, D, x.dtype)
    n_t = pl.cdiv(N, ts)

    w2 = weight.reshape(1, D)
    b2 = bias.reshape(1, D)

    # VMEM budget: double-buffered input + output tiles, plus the whole-tile
    # f32 temporaries materialized inside the kernel (x_f32, centered, out_f32),
    # plus weight/bias and slack.  Clamp below v7x's 64 MiB physical VMEM.
    tile_io = ts * D * itemsize
    tile_f32 = ts * D * 4
    vmem_est = 4 * tile_io + 3 * tile_f32 + 2 * D * 4 + (1 << 20)
    vmem_limit = int(min(max(vmem_est, 16 << 20), 48 << 20))

    cost = pl.CostEstimate(
        flops=8 * N * D,
        transcendentals=2 * N,  # sqrt + reciprocal per row
        bytes_accessed=2 * N * D * itemsize + 2 * D * itemsize,
    )

    out = pl.pallas_call(
        _layer_norm_kernel,
        out_shape=jax.ShapeDtypeStruct((N, D), x.dtype),
        grid_spec=pltpu.PrefetchScalarGridSpec(
            num_scalar_prefetch=0,
            grid=(n_t,),
            in_specs=[
                pl.BlockSpec((ts, D), lambda i: (i, 0)),   # x tile
                pl.BlockSpec((1, D), lambda i: (0, 0)),    # weight (resident)
                pl.BlockSpec((1, D), lambda i: (0, 0)),    # bias (resident)
            ],
            out_specs=pl.BlockSpec((ts, D), lambda i: (i, 0)),
        ),
        compiler_params=pltpu.CompilerParams(
            dimension_semantics=("parallel",),
            vmem_limit_bytes=vmem_limit,
        ),
        cost_estimate=cost,
    )(x2, w2, b2)

    return out.reshape(orig_shape)


def decoder_forward(x, encoder_output, src_mask, tgt_mask, weight, bias, layers=()):
    """Pallas-backed Decoder.forward.

    `layers` is the nn.ModuleList from the PyTorch module: arbitrary
    user-supplied decoder blocks.  They have no generic Pallas translation,
    so they are applied here as plain JAX callables with signature
    layer(x, encoder_output, src_mask, tgt_mask) -> x; only the final
    LayerNormalization runs as a Pallas kernel.
    """
    # TODO(synk): the decoder blocks in `layers` are user-defined nn.Modules
    # (self-attn / cross-attn / FFN) and are not translated to Pallas here.
    for layer in layers:
        x = layer(x, encoder_output, src_mask, tgt_mask)
    return layer_norm_pallas(x, weight, bias)


if __name__ == "__main__":
    d_model = 128   # lane-dense last dim (multiple of 128)
    seq_len = 8
    src_len = 8
    batch = 2

    key = jax.random.PRNGKey(0)
    kx, kenc, kw, kb = jax.random.split(key, 4)

    x = jax.random.normal(kx, (batch, seq_len, d_model), dtype=jnp.float32)
    encoder_output = jax.random.normal(kenc, (batch, src_len, d_model), dtype=jnp.float32)
    src_mask = jnp.ones((batch, 1, seq_len, src_len), dtype=jnp.float32)
    tgt_mask = jnp.tril(jnp.ones((seq_len, seq_len), dtype=jnp.float32))[None, None]
    tgt_mask = jnp.broadcast_to(tgt_mask, (batch, 1, seq_len, seq_len))

    # Module init is weight=ones, bias=zeros; use non-trivial (deterministic)
    # values so the affine part of the kernel is actually exercised.
    weight = 1.0 + 0.1 * jax.random.normal(kw, (d_model,), dtype=jnp.float32)
    bias = 0.1 * jax.random.normal(kb, (d_model,), dtype=jnp.float32)

    out = decoder_forward(x, encoder_output, src_mask, tgt_mask, weight, bias, layers=())
    out = jax.block_until_ready(out)

    # Pure-JAX reference with PyTorch semantics (unbiased std, divide by std+eps).
    mean = jnp.mean(x, axis=-1, keepdims=True)
    std = jnp.std(x, axis=-1, keepdims=True, ddof=1)
    ref = weight * (x - mean) / (std + _EPS) + bias

    assert out.shape == (batch, seq_len, d_model)
    assert jnp.allclose(out, ref, atol=1e-5, rtol=1e-5), float(jnp.max(jnp.abs(out - ref)))

    print("KERNEL_OK")
</pallas_src>

<mosaic_0001>
module attributes {stable_mosaic.version = 11 : i64} {
  func.func @_layer_norm_kernel(%arg0: i32, %arg1: memref<16x128xf32, #tpu.memory_space<vmem>>, %arg2: memref<1x128xf32, #tpu.memory_space<vmem>>, %arg3: memref<1x128xf32, #tpu.memory_space<vmem>>, %arg4: memref<16x128xf32, #tpu.memory_space<vmem>>) attributes {dimension_semantics = [#tpu.dimension_semantics<parallel>], iteration_bounds = array<i64: 1>, scalar_prefetch = 0 : i64, scratch_operands = 0 : i64, tpu.core_type = #tpu.core_type<tc>, window_params = [{transform_indices = @transform_0, window_bounds = array<i64: 16, 128>}, {pipeline_mode = #tpu.pipeline_mode<synchronous>, transform_indices = @transform_1, window_bounds = array<i64: 1, 128>}, {pipeline_mode = #tpu.pipeline_mode<synchronous>, transform_indices = @transform_2, window_bounds = array<i64: 1, 128>}, {transform_indices = @transform_3, window_bounds = array<i64: 16, 128>}]} {
    %c0 = arith.constant 0 : index
    %c0_0 = arith.constant 0 : index
    %0 = vector.load %arg1[%c0, %c0_0] : memref<16x128xf32, #tpu.memory_space<vmem>>, vector<16x128xf32>
    %cst = arith.constant dense<0.000000e+00> : vector<16xf32>
    %1 = vector.multi_reduction <add>, %0, %cst [1] : vector<16x128xf32> to vector<16xf32>
    %2 = vector.shape_cast %1 : vector<16xf32> to vector<16x1xf32>
    %cst_1 = arith.constant 1.280000e+02 : f32
    %3 = vector.broadcast %cst_1 : f32 to vector<16x1xf32>
    %4 = arith.divf %2, %3 : vector<16x1xf32>
    %5 = vector.broadcast %4 : vector<16x1xf32> to vector<16x128xf32>
    %6 = arith.subf %0, %5 : vector<16x128xf32>
    %7 = arith.mulf %6, %6 : vector<16x128xf32>
    %cst_2 = arith.constant dense<0.000000e+00> : vector<16xf32>
    %8 = vector.multi_reduction <add>, %7, %cst_2 [1] : vector<16x128xf32> to vector<16xf32>
    %9 = vector.shape_cast %8 : vector<16xf32> to vector<16x1xf32>
    %cst_3 = arith.constant 1.270000e+02 : f32
    %10 = vector.broadcast %cst_3 : f32 to vector<16x1xf32>
    %11 = arith.divf %9, %10 : vector<16x1xf32>
    %12 = math.sqrt %11 : vector<16x1xf32>
    %cst_4 = arith.constant 9.99999997E-7 : f32
    %13 = vector.broadcast %cst_4 : f32 to vector<16x1xf32>
    %14 = arith.addf %12, %13 : vector<16x1xf32>
    %cst_5 = arith.constant 1.000000e+00 : f32
    %15 = vector.broadcast %cst_5 : f32 to vector<16x1xf32>
    %16 = arith.divf %15, %14 : vector<16x1xf32>
    %c0_6 = arith.constant 0 : index
    %c0_7 = arith.constant 0 : index
    %17 = vector.load %arg2[%c0_6, %c0_7] : memref<1x128xf32, #tpu.memory_space<vmem>>, vector<1x128xf32>
    %c0_8 = arith.constant 0 : index
    %c0_9 = arith.constant 0 : index
    %18 = vector.load %arg3[%c0_8, %c0_9] : memref<1x128xf32, #tpu.memory_space<vmem>>, vector<1x128xf32>
    %19 = vector.broadcast %16 : vector<16x1xf32> to vector<16x128xf32>
    %20 = arith.mulf %6, %19 : vector<16x128xf32>
    %21 = vector.broadcast %17 : vector<1x128xf32> to vector<16x128xf32>
    %22 = arith.mulf %21, %20 : vector<16x128xf32>
    %23 = vector.broadcast %18 : vector<1x128xf32> to vector<16x128xf32>
    %24 = arith.addf %22, %23 : vector<16x128xf32>
    %c0_10 = arith.constant 0 : index
    %c0_11 = arith.constant 0 : index
    %25 = vector.load %arg4[%c0_10, %c0_11] : memref<16x128xf32, #tpu.memory_space<vmem>>, vector<16x128xf32>
    tpu.vector_store %arg4[%c0_10, %c0_11], %24 {strides = array<i32>} : memref<16x128xf32, #tpu.memory_space<vmem>>, vector<16x128xf32>,
    return
  }
  func.func @transform_0(%arg0: i32) -> (i32, i32) {
    %c0_i32 = arith.constant 0 : i32
    %c0_i32_0 = arith.constant 0 : i32
    return %arg0, %c0_i32 : i32, i32
  }
  func.func @transform_1(%arg0: i32) -> (i32, i32) {
    %c0_i32 = arith.constant 0 : i32
    %c0_i32_0 = arith.constant 0 : i32
    %c0_i32_1 = arith.constant 0 : i32
    return %c0_i32, %c0_i32_0 : i32, i32
  }
  func.func @transform_2(%arg0: i32) -> (i32, i32) {
    %c0_i32 = arith.constant 0 : i32
    %c0_i32_0 = arith.constant 0 : i32
    %c0_i32_1 = arith.constant 0 : i32
    return %c0_i32, %c0_i32_0 : i32, i32
  }
  func.func @transform_3(%arg0: i32) -> (i32, i32) {
    %c0_i32 = arith.constant 0 : i32
    %c0_i32_0 = arith.constant 0 : i32
    return %arg0, %c0_i32 : i32, i32
  }
}

</mosaic_0001>

<bundles_post_ra>
// kernel: tpu_custom_call.1
= control target key start
LH: loop header
LB: loop body
LE: loop exit
PB: predicated region body
PF: predicated region fallthrough
CT: control target
= control target key end

     0   :  { %8 = vsyncpa [#allocation3], 0  ;;  %s230_s0 = inlined_call_operand.hbm [shape: f32[16,128], index: 0, kind: input, shape index: {}]   ;;  %s231_s1 = inlined_call_operand.vmem [shape: f32[1,128], index: 1, kind: input, shape index: {}]   ;;  %s232_s2 = inlined_call_operand.vmem [shape: f32[1,128], index: 2, kind: input, shape index: {}]   ;;  %s233_s3 = inlined_call_operand.hbm [shape: f32[16,128], index: 3, kind: output, shape index: {}]  }
   0x1   :  { %9 = vsyncpa [#allocation4], 0  ;;  %s170_s12 = smov [#allocation2]   ;;  %s122_s16 = scalar_lea.hbm %s230_s0, 256 }
   0x2   :  { %s15_s13 = sshll.u32 %s170_s12, 4  ;;  %p123_p0 = scmp.ne.s32.totalorder %s230_s0, %s122_s16  ;;  %s16_s13 = int_to_ptr.vmem [resolvable:$true] %s15_s13 }
   0x3   :  { %p126_p1 = scmp.lt.u32.totalorder %s122_s16, %s230_s0 }
   0x5   :  { %p128_p2 = pnand %p126_p1, %p123_p0 }
   0x7   :  { %131 = shalt.err (!%p128_p2)
}
   0x8   :  { %s132_s21 = scalar_lea.vmem %s16_s13, 256  ;;  %p137_p4 = scmp.lt.s32.totalorder %s16_s13, %s16_s13 }
   0x9   :  { %p133_p3 = scmp.ne.s32.totalorder %s16_s13, %s132_s21  ;;  %p138_p5 = scmp.lt.s32.totalorder %s132_s21, %s132_s21 }
   0xb   :  { %p139_p6 = por %p138_p5, %p137_p4 }
   0xd   :  { %p140_p7 = pnand %p139_p6, %p133_p3 }
   0xf   :  { %143 = shalt.err (!%p140_p7)
}
  0x10   :  { %s171_s22 = smov 128   ;;  %s172_s23 = smov 8  }
  0x11   :  { %21 = dma.hbm_to_vmem [thread:$0]  %s230_s0, 256, %s16_s13, [#allocation3], %s171_s22, %s171_s22, %s172_s23  }
  0x12   :  { %166 = dma.done.wait [#allocation3], 256  }
  0x13   :  { %167 = vsyncadd [#allocation3], 4294967040  ;;  %v29_v0 = vld [vmem:[#allocation2] sm:$0xff]  ;;  %v30_v1 = vld [vmem:[#allocation2 + $0x8] sm:$0xff]  ;;  %s173_s29 = smov [#allocation5]  }
  0x14   :  { %31 = vadd.xlane.f32.xlu0 %v29_v0  ;;  %v108_v27 = vld [vmem:[%s231_s1] ss:$0 sm:$0xff]  ;;  %s96_s30 = sshll.u32 %s173_s29, 4  ;;  %s97_s30 = int_to_ptr.vmem [resolvable:$true] %s96_s30 }
  0x15   :  { %v109_v29 = vld [vmem:[%s232_s2] ss:$0 sm:$0xff]  ;;  %s144_s4 = scalar_lea.vmem %s97_s30, 256  ;;  %p149_p9 = scmp.lt.s32.totalorder %s97_s30, %s97_s30 }
  0x16   :  { %p145_p8 = scmp.ne.s32.totalorder %s97_s30, %s144_s4  ;;  %p150_p10 = scmp.lt.s32.totalorder %s144_s4, %s144_s4 }
  0x18   :  { %33 = vadd.xlane.f32.xlu0 %v30_v1  ;;  %p151_p11 = por %p150_p10, %p149_p9 }
  0x1a   :  { %p152_p12 = pnand %p151_p11, %p145_p8 }
  0xa1   :  { %v32_v2 = vpop.xlane.xlu0 %31 }
  0xa2   :  { %v36_v3 = vmul.f32 0.0078125, %v32_v2 }
  0xa4   :  { %v38_v4 = vsub.f32 %v29_v0, %v36_v3 }
  0xa5   :  { %v34_v5 = vpop.xlane.xlu0 %33 }
  0xa6   :  { %v37_v6 = vmul.f32 0.0078125, %v34_v5  ;;  %v40_v7 = vmul.f32 %v38_v4, %v38_v4 }
  0xa8   :  { %v39_v8 = vsub.f32 %v30_v1, %v37_v6  ;;  %42 = vadd.xlane.f32.xlu1 %v40_v7 }
  0xaa   :  { %v41_v9 = vmul.f32 %v39_v8, %v39_v8 }
  0xac   :  { %44 = vadd.xlane.f32.xlu1 %v41_v9 }
 0x135   :  { %v43_v10 = vpop.xlane.xlu1 %42 }
 0x136   :  { %v47_v11 = vmul.f32 0.007874016, %v43_v10 }
 0x138   :  { %114 = vrsqrt.f32 %v47_v11  ;;  %vm51_vm0 = vcmp.eq.f32.partialorder %v47_v11, inf  ;;  %v54_v16 = vand.u32 2147483648, %v47_v11  ;;  %vm53_vm1 = vcmp.eq.f32.partialorder %v47_v11, 0.0 }
 0x139   :  { %v45_v12 = vpop.xlane.xlu1 %44 }
 0x13a   :  { %v48_v13 = vmul.f32 0.007874016, %v45_v12 }
 0x13c   :  { %116 = vrsqrt.f32 %v48_v13  ;;  %vm58_vm2 = vcmp.eq.f32.partialorder %v48_v13, inf  ;;  %v61_v22 = vand.u32 2147483648, %v48_v13  ;;  %vm60_vm3 = vcmp.eq.f32.partialorder %v48_v13, 0.0 }
 0x142   :  { %v115_v14 = vpop.eup %114 }
 0x143   :  { %v50_v15 = vmul.f32 %v115_v14, %v47_v11 }
 0x145   :  { %v52_v17 = vsel %vm51_vm0, %v47_v11, %v50_v15 }
 0x146   :  { %v117_v18 = vpop.eup %116  ;;  %v55_v19 = vsel %vm53_vm1, %v54_v16, %v52_v17 }
 0x147   :  { %v57_v20 = vmul.f32 %v117_v18, %v48_v13  ;;  %v63_v21 = vadd.f32 1e-06, %v55_v19 }
 0x149   :  { %v59_v23 = vsel %vm58_vm2, %v48_v13, %v57_v20  ;;  %118 = vrcp.f32 %v63_v21 }
 0x14a   :  { %v62_v24 = vsel %vm60_vm3, %v61_v22, %v59_v23 }
 0x14b   :  { %v64_v25 = vadd.f32 1e-06, %v62_v24 }
 0x14d   :  { %120 = vrcp.f32 %v64_v25 }
 0x153   :  { %v119_v26 = vpop.eup %118 }
 0x154   :  { %v71_v28 = vmul.f32 %v119_v26, %v38_v4 }
 0x156   :  { %v79_v30 = vmul.f32 %v108_v27, %v71_v28 }
 0x157   :  { %v121_v31 = vpop.eup %120 }
 0x158   :  { %v72_v32 = vmul.f32 %v121_v31, %v39_v8  ;;  %v87_v33 = vadd.f32 %v109_v29, %v79_v30 }
 0x15a   :  { %v80_v34 = vmul.f32 %v108_v27, %v72_v32  ;;  %89 = vst [vmem:[#allocation5] sm:$0xff] %v87_v33 }
 0x15c   :  { %v88_v35 = vadd.f32 %v109_v29, %v80_v34 }
 0x15e   :  { %90 = vst [vmem:[#allocation5 + $0x8] sm:$0xff] %v88_v35 }
 0x15f   :  { %155 = shalt.err (!%p152_p12)
}
 0x160   :  { %s156_s5 = scalar_lea.hbm %s233_s3, 256 }
 0x161   :  { %p157_p13 = scmp.ne.s32.totalorder %s233_s3, %s156_s5  ;;  %p160_p0 = scmp.lt.u32.totalorder %s156_s5, %s233_s3 }
 0x163   :  { %p162_p1 = pnand %p160_p0, %p157_p13 }
 0x165   :  { %165 = shalt.err (!%p162_p1)
}
 0x166   :  { %102 = dma.vmem_to_hbm [thread:$0]  %s97_s30, 256, %s233_s3, [#allocation4], %s171_s22, %s171_s22, %s172_s23  }
 0x167   :  { %168 = dma.done.wait [#allocation4], 256  }
 0x168   :  { %169 = vsyncadd [#allocation4], 4294967040 }
 0x169   :  { %106 = vsyncpa [#allocation3], 1 }
 0x16a   :  { %107 = vsyncpa [#allocation4], 1 }

</bundles_post_ra>
